<compile_context>
chip_gen: v6e
topology: v6e:2x2x1
jax: 0.10.0
libtpu: 0.0.40
codegen_flags: <defaults>
</compile_context>

<pallas_src>
import jax
import jax.numpy as jnp
from jax.experimental import pallas as pl
from jax.experimental.pallas import tpu as pltpu


def _bin_classifier_kernel(params_ref, x_ref, o_ref):
    # params_ref: SMEM (3,) f32 = [w00, w01, b0]       (scalar-prefetched)
    # x_ref:      VMEM (2, tr, L) f32 -- feature planes, batch dense on (sublane, lane)
    # o_ref:      VMEM (tr, L) f32    -- lane/sublane-dense output tile
    w0 = params_ref[0]
    w1 = params_ref[1]
    b0 = params_ref[2]

    x0 = x_ref[0]                      # (tr, L)
    x1 = x_ref[1]                      # (tr, L)

    # Linear on the VPU (two vmul + vadd); no MXU for a 2-wide contraction.
    z = x0 * w0 + x1 * w1 + b0

    # Exact sigmoid: single EUP tanh push (VALU stays nearly free).
    y = 0.5 * jnp.tanh(0.5 * z) + 0.5
    o_ref[...] = y.astype(o_ref.dtype)


def bin_classifier_forward(x, weight, bias, *, block_rows=512, lanes=1024):
    """x: (B, 2) f32, weight: (1, 2) f32, bias: (1,) f32 -> (B, 1) f32."""
    B, F = x.shape
    O, F2 = weight.shape
    assert F == 2 and F2 == 2 and O == 1
    assert lanes % 128 == 0
    block_rows = max(8, 8 * (block_rows // 8))

    x = x.astype(jnp.float32)
    # Pack the 3 parameters into one SMEM scalar vector (scalar prefetch).
    params = jnp.concatenate(
        [weight.reshape(-1), bias.reshape(-1)]).astype(jnp.float32)     # (3,)

    L = lanes
    quant = 8 * L                                   # minimal row quantum (sublane-dense)
    Bp = quant * pl.cdiv(B, quant)
    R = Bp // L                                     # rows; always a multiple of 8

    # Single wrapper relayout: split features into dense planes. Pad only when unaligned.
    xt = jnp.transpose(x)                           # (2, B)
    if Bp != B:
        xt = jnp.pad(xt, ((0, 0), (0, Bp - B)))     # (2, Bp)
    x3 = xt.reshape(2, R, L)                        # free (contiguous) reshape

    # Row tile: as big as VMEM comfortably allows; >= 2 grid steps when possible so the
    # "parallel" axis can be sharded across v7x's 2 TensorCores.
    tr = min(block_rows, R)
    if R >= 16:
        tr = min(tr, 8 * pl.cdiv(R, 16))
    nsteps = pl.cdiv(R, tr)                         # ragged last block handled by Pallas

    out2d = pl.pallas_call(
        _bin_classifier_kernel,
        out_shape=jax.ShapeDtypeStruct((R, L), jnp.float32),
        grid_spec=pltpu.PrefetchScalarGridSpec(
            num_scalar_prefetch=1,                  # params -> SMEM
            grid=(nsteps,),
            in_specs=[pl.BlockSpec((2, tr, L), lambda i, p: (0, i, 0))],
            out_specs=pl.BlockSpec((tr, L), lambda i, p: (i, 0)),
        ),
        compiler_params=pltpu.CompilerParams(
            dimension_semantics=("parallel",),      # megacore on v7x
            vmem_limit_bytes=32 * 1024 * 1024,      # covers v5e's 16 MiB default scope
        ),
        cost_estimate=pl.CostEstimate(
            flops=7 * Bp, transcendentals=Bp, bytes_accessed=12 * Bp),
    )(params, x3)

    out_flat = out2d.reshape(Bp)                    # free (contiguous) reshape
    if Bp != B:
        out_flat = out_flat[:B]
    return out_flat.reshape(B, 1)


if __name__ == "__main__":
    key = jax.random.PRNGKey(0)
    kx, kw, kb, kx2 = jax.random.split(key, 4)

    B, IN, OUT = 8, 2, 1
    x = jax.random.normal(kx, (B, IN), dtype=jnp.float32)

    # Deterministic init mirroring nn.Linear(2, 1): U(-1/sqrt(in), 1/sqrt(in))
    bound = 1.0 / (IN ** 0.5)
    weight = jax.random.uniform(kw, (OUT, IN), minval=-bound, maxval=bound,
                                dtype=jnp.float32)
    bias = jax.random.uniform(kb, (OUT,), minval=-bound, maxval=bound,
                              dtype=jnp.float32)

    out = jax.block_until_ready(bin_classifier_forward(x, weight, bias))
    ref = jax.nn.sigmoid(x @ weight.T + bias)
    assert out.shape == (B, OUT)
    assert jnp.allclose(out, ref, atol=1e-5, rtol=1e-4)

    # Exercise the multi-step "parallel" grid + ragged last row-block path
    # (Bp = 24576 -> R = 24 rows, row tile 16 -> 2 grid steps, last block masked).
    B2 = 20000
    x2 = jax.random.normal(kx2, (B2, IN), dtype=jnp.float32)
    out2 = jax.block_until_ready(bin_classifier_forward(x2, weight, bias))
    ref2 = jax.nn.sigmoid(x2 @ weight.T + bias)
    assert out2.shape == (B2, OUT)
    assert jnp.allclose(out2, ref2, atol=1e-5, rtol=1e-4)

    print("KERNEL_OK")
</pallas_src>

<mosaic_0001>
module attributes {stable_mosaic.version = 11 : i64} {
  func.func @_bin_classifier_kernel(%arg0: i32, %arg1: memref<3xf32, #tpu.memory_space<smem>>, %arg2: memref<2x8x1024xf32, #tpu.memory_space<vmem>>, %arg3: memref<8x1024xf32, #tpu.memory_space<vmem>>) attributes {dimension_semantics = [#tpu.dimension_semantics<parallel>], iteration_bounds = array<i64: 1>, scalar_prefetch = 1 : i64, scratch_operands = 0 : i64, tpu.core_type = #tpu.core_type<tc>, window_params = [{transform_indices = @transform_0, window_bounds = array<i64: 2, 8, 1024>}, {transform_indices = @transform_1, window_bounds = array<i64: 8, 1024>}]} {
    %c0 = arith.constant 0 : index
    %0 = memref.load %arg1[%c0] : memref<3xf32, #tpu.memory_space<smem>>
    %c1 = arith.constant 1 : index
    %1 = memref.load %arg1[%c1] : memref<3xf32, #tpu.memory_space<smem>>
    %c2 = arith.constant 2 : index
    %2 = memref.load %arg1[%c2] : memref<3xf32, #tpu.memory_space<smem>>
    %c0_0 = arith.constant 0 : index
    %c0_1 = arith.constant 0 : index
    %c0_2 = arith.constant 0 : index
    %3 = vector.load %arg2[%c0_0, %c0_1, %c0_2] : memref<2x8x1024xf32, #tpu.memory_space<vmem>>, vector<1x8x1024xf32>
    %4 = vector.shape_cast %3 : vector<1x8x1024xf32> to vector<8x1024xf32>
    %c1_3 = arith.constant 1 : index
    %c0_4 = arith.constant 0 : index
    %c0_5 = arith.constant 0 : index
    %5 = vector.load %arg2[%c1_3, %c0_4, %c0_5] : memref<2x8x1024xf32, #tpu.memory_space<vmem>>, vector<1x8x1024xf32>
    %6 = vector.shape_cast %5 : vector<1x8x1024xf32> to vector<8x1024xf32>
    %7 = vector.broadcast %0 : f32 to vector<8x1024xf32>
    %8 = arith.mulf %4, %7 : vector<8x1024xf32>
    %9 = vector.broadcast %1 : f32 to vector<8x1024xf32>
    %10 = arith.mulf %6, %9 : vector<8x1024xf32>
    %11 = arith.addf %8, %10 : vector<8x1024xf32>
    %12 = vector.broadcast %2 : f32 to vector<8x1024xf32>
    %13 = arith.addf %11, %12 : vector<8x1024xf32>
    %cst = arith.constant 5.000000e-01 : f32
    %14 = vector.broadcast %cst : f32 to vector<8x1024xf32>
    %15 = arith.mulf %14, %13 : vector<8x1024xf32>
    %16 = math.tanh %15 : vector<8x1024xf32>
    %cst_6 = arith.constant 5.000000e-01 : f32
    %17 = vector.broadcast %cst_6 : f32 to vector<8x1024xf32>
    %18 = arith.mulf %17, %16 : vector<8x1024xf32>
    %cst_7 = arith.constant 5.000000e-01 : f32
    %19 = vector.broadcast %cst_7 : f32 to vector<8x1024xf32>
    %20 = arith.addf %18, %19 : vector<8x1024xf32>
    %c0_8 = arith.constant 0 : index
    %c0_9 = arith.constant 0 : index
    %21 = vector.load %arg3[%c0_8, %c0_9] : memref<8x1024xf32, #tpu.memory_space<vmem>>, vector<8x1024xf32>
    tpu.vector_store %arg3[%c0_8, %c0_9], %20 {strides = array<i32>} : memref<8x1024xf32, #tpu.memory_space<vmem>>, vector<8x1024xf32>,
    return
  }
  func.func @transform_0(%arg0: i32, %arg1: memref<3xf32, #tpu.memory_space<smem>>) -> (i32, i32, i32) {
    %c0_i32 = arith.constant 0 : i32
    %c0_i32_0 = arith.constant 0 : i32
    %c0_i32_1 = arith.constant 0 : i32
    return %c0_i32, %arg0, %c0_i32_0 : i32, i32, i32
  }
  func.func @transform_1(%arg0: i32, %arg1: memref<3xf32, #tpu.memory_space<smem>>) -> (i32, i32) {
    %c0_i32 = arith.constant 0 : i32
    %c0_i32_0 = arith.constant 0 : i32
    return %arg0, %c0_i32 : i32, i32
  }
}

</mosaic_0001>

<bundles_post_ra>
// kernel: tpu_custom_call.1
= control target key start
LH: loop header
LB: loop body
LE: loop exit
PB: predicated region body
PF: predicated region fallthrough
CT: control target
= control target key end

     0   :  { %s215_s9 = smov [#allocation3]   ;;  %s244_s0 = inlined_call_operand.hbm [shape: f32[3], index: 0, kind: input, shape index: {}]   ;;  %s245_s1 = inlined_call_operand.hbm [shape: f32[2,8,1024], index: 1, kind: input, shape index: {}]   ;;  %s246_s2 = inlined_call_operand.hbm [shape: f32[8,1024], index: 2, kind: output, shape index: {}]  }
   0x1   :  { %8 = dma.hbm_to_smem %s244_s0, 16, %s215_s9, [#allocation2] }
   0x2   :  { %209 = dma.done.wait [#allocation2], 16 }
   0x3   :  { %210 = vsyncadd [#allocation2], 4294967280 }
   0x4   :  { %10 = sfence }
   0x5   :  { %11 = vsyncpa [#allocation5], 0 }
   0x6   :  { %12 = vsyncpa [#allocation6], 0  ;;  %s216_s12 = smov [#allocation4]  }
   0x7   :  { %s18_s13 = sshll.u32 %s216_s12, 4  ;;  %s19_s13 = int_to_ptr.vmem [resolvable:$true] %s18_s13 }
   0x8   :  { %s177_s14 = scalar_lea.vmem %s19_s13, 2048  ;;  %p182_p1 = scmp.lt.s32.totalorder %s19_s13, %s19_s13 }
   0x9   :  { %p178_p0 = scmp.ne.s32.totalorder %s19_s13, %s177_s14  ;;  %p183_p2 = scmp.lt.s32.totalorder %s177_s14, %s177_s14 }
   0xb   :  { %p184_p3 = por %p183_p2, %p182_p1 }
   0xd   :  { %p185_p4 = pnand %p184_p3, %p178_p0 }
   0xf   :  { %188 = shalt.err (!%p185_p4)
}
  0x10   :  { %s217_s15 = smov 1024   ;;  %s218_s16 = smov 64  }
  0x11   :  { %24 = dma.hbm_to_vmem [thread:$0]  %s245_s1, 2048, %s19_s13, [#allocation5], %s217_s15, %s217_s15, %s218_s16  }
  0x12   :  { %211 = dma.done.wait [#allocation5], 2048  }
  0x13   :  { %212 = vsyncadd [#allocation5], 4294965248  ;;  %s28_s0 = sld [smem:[#allocation3]]  ;;  %v31_v0 = vld [vmem:[#allocation4] sm:$0xff]  ;;  %v32_v3 = vld [vmem:[#allocation4 + $0x8] sm:$0xff]  ;;  %s219_s1 = smov [#allocation7]  }
  0x14   :  { %s138_s19 = sld [smem:[#allocation3 + $0x1]]  ;;  %v40_v1 = vld [vmem:[#allocation4 + $0x40] sm:$0xff]  ;;  %v41_v6 = vld [vmem:[#allocation4 + $0x48] sm:$0xff]  ;;  %v33_v8 = vld [vmem:[#allocation4 + $0x10] sm:$0xff]  ;;  %s129_s21 = sshll.u32 %s219_s1, 4  ;;  %s130_s21 = int_to_ptr.vmem [resolvable:$true] %s129_s21 }
  0x15   :  { %s139_s20 = sld [smem:[#allocation3 + $0x2]]  ;;  %v42_v9 = vld [vmem:[#allocation4 + $0x50] sm:$0xff]  ;;  %v34_v14 = vld [vmem:[#allocation4 + $0x18] sm:$0xff]  ;;  %v35_v16 = vld [vmem:[#allocation4 + $0x20] sm:$0xff]  ;;  %s189_s22 = scalar_lea.vmem %s130_s21, 1024 }
  0x16   :  { %v43_v15 = vld [vmem:[#allocation4 + $0x58] sm:$0xff]  ;;  %v44_v20 = vld [vmem:[#allocation4 + $0x60] sm:$0xff]  ;;  %v36_v22 = vld [vmem:[#allocation4 + $0x28] sm:$0xff]  ;;  %p190_p5 = scmp.ne.s32.totalorder %s130_s21, %s189_s22  ;;  %p194_p6 = scmp.lt.s32.totalorder %s130_s21, %s130_s21 }
  0x17   :  { %v45_v23 = vld [vmem:[#allocation4 + $0x68] sm:$0xff]  ;;  %v37_v28 = vld [vmem:[#allocation4 + $0x30] sm:$0xff]  ;;  %v38_v30 = vld [vmem:[#allocation4 + $0x38] sm:$0xff]  ;;  %p195_p7 = scmp.lt.s32.totalorder %s189_s22, %s189_s22 }
  0x18   :  { %v46_v29 = vld [vmem:[#allocation4 + $0x70] sm:$0xff]  ;;  %v47_v39 = vld [vmem:[#allocation4 + $0x78] sm:$0xff] }
  0x19   :  { %v48_v2 = vstv %s28_s0  ;;  %p196_p8 = por %p195_p7, %p194_p6 }
  0x1a   :  { %v49_v4 = vmul.f32 %v48_v2, %v31_v0  ;;  %v57_v5 = vstv %s138_s19  ;;  %v50_v7 = vmul.f32 %v48_v2, %v32_v3  ;;  %v51_v13 = vmul.f32 %v48_v2, %v33_v8 }
  0x1b   :  { %v58_v10 = vmul.f32 %v57_v5, %v40_v1  ;;  %v74_v11 = vstv %s139_s20  ;;  %v59_v12 = vmul.f32 %v57_v5, %v41_v6  ;;  %v60_v17 = vmul.f32 %v57_v5, %v42_v9  ;;  %p197_p9 = pnand %p196_p8, %p190_p5 }
  0x1c   :  { %v52_v18 = vmul.f32 %v48_v2, %v34_v14  ;;  %v61_v19 = vmul.f32 %v57_v5, %v43_v15  ;;  %v53_v21 = vmul.f32 %v48_v2, %v35_v16  ;;  %v62_v26 = vmul.f32 %v57_v5, %v44_v20 }
  0x1d   :  { %v66_v24 = vadd.f32 %v58_v10, %v49_v4  ;;  %v67_v25 = vadd.f32 %v59_v12, %v50_v7  ;;  %v54_v27 = vmul.f32 %v48_v2, %v36_v22  ;;  %v68_v31 = vadd.f32 %v60_v17, %v51_v13 }
  0x1e   :  { %v69_v32 = vadd.f32 %v61_v19, %v52_v18  ;;  %v63_v33 = vmul.f32 %v57_v5, %v45_v23  ;;  %v55_v34 = vmul.f32 %v48_v2, %v37_v28  ;;  %v70_v37 = vadd.f32 %v62_v26, %v53_v21 }
  0x1f   :  { %v75_v35 = vadd.f32 %v74_v11, %v66_v24  ;;  %v76_v36 = vadd.f32 %v74_v11, %v67_v25  ;;  %v64_v38 = vmul.f32 %v57_v5, %v46_v29  ;;  %v77_v40 = vadd.f32 %v74_v11, %v68_v31 }
  0x20   :  { %v78_v41 = vadd.f32 %v74_v11, %v69_v32  ;;  %v71_v42 = vadd.f32 %v63_v33, %v54_v27  ;;  %v56_v43 = vmul.f32 %v48_v2, %v38_v30  ;;  %v79_v46 = vadd.f32 %v74_v11, %v70_v37 }
  0x21   :  { %v83_v44 = vmul.f32 0.5, %v75_v35  ;;  %v84_v45 = vmul.f32 0.5, %v76_v36  ;;  %v72_v47 = vadd.f32 %v64_v38, %v55_v34  ;;  %v85_v48 = vmul.f32 0.5, %v77_v40 }
  0x22   :  { %v86_v49 = vmul.f32 0.5, %v78_v41  ;;  %v80_v50 = vadd.f32 %v74_v11, %v71_v42  ;;  %v65_v51 = vmul.f32 %v57_v5, %v47_v39  ;;  %v87_v52 = vmul.f32 0.5, %v79_v46 }
  0x23   :  { %145 = vtanh.f32 %v83_v44  ;;  %v81_v53 = vadd.f32 %v74_v11, %v72_v47 }
  0x24   :  { %147 = vtanh.f32 %v84_v45  ;;  %v88_v54 = vmul.f32 0.5, %v80_v50  ;;  %v73_v55 = vadd.f32 %v65_v51, %v56_v43 }
  0x25   :  { %149 = vtanh.f32 %v85_v48  ;;  %v89_v56 = vmul.f32 0.5, %v81_v53 }
  0x26   :  { %151 = vtanh.f32 %v86_v49  ;;  %v82_v57 = vadd.f32 %v74_v11, %v73_v55 }
  0x27   :  { %153 = vtanh.f32 %v87_v52 }
  0x28   :  { %155 = vtanh.f32 %v88_v54  ;;  %v90_v58 = vmul.f32 0.5, %v82_v57 }
  0x29   :  { %157 = vtanh.f32 %v89_v56 }
  0x2a   :  { %159 = vtanh.f32 %v90_v58 }
  0x30   :  { %v146_v59 = vpop.eup %145 }
  0x31   :  { %v148_v60 = vpop.eup %147  ;;  %v99_v61 = vmul.f32 0.5, %v146_v59 }
  0x32   :  { %v150_v62 = vpop.eup %149  ;;  %v100_v63 = vmul.f32 0.5, %v148_v60 }
  0x33   :  { %v152_v0 = vpop.eup %151  ;;  %v107_v1 = vadd.f32 0.5, %v99_v61  ;;  %v101_v2 = vmul.f32 0.5, %v150_v62 }
  0x34   :  { %v154_v3 = vpop.eup %153  ;;  %v108_v4 = vadd.f32 0.5, %v100_v63  ;;  %v102_v5 = vmul.f32 0.5, %v152_v0 }
  0x35   :  { %v156_v6 = vpop.eup %155  ;;  %115 = vst [vmem:[#allocation7] sm:$0xff] %v107_v1  ;;  %v109_v7 = vadd.f32 0.5, %v101_v2  ;;  %v103_v8 = vmul.f32 0.5, %v154_v3 }
  0x36   :  { %v158_v9 = vpop.eup %157  ;;  %116 = vst [vmem:[#allocation7 + $0x8] sm:$0xff] %v108_v4  ;;  %v110_v10 = vadd.f32 0.5, %v102_v5  ;;  %v104_v11 = vmul.f32 0.5, %v156_v6 }
  0x37   :  { %v160_v12 = vpop.eup %159  ;;  %117 = vst [vmem:[#allocation7 + $0x10] sm:$0xff] %v109_v7  ;;  %v111_v13 = vadd.f32 0.5, %v103_v8  ;;  %v105_v14 = vmul.f32 0.5, %v158_v9 }
  0x38   :  { %118 = vst [vmem:[#allocation7 + $0x18] sm:$0xff] %v110_v10  ;;  %v112_v15 = vadd.f32 0.5, %v104_v11  ;;  %v106_v16 = vmul.f32 0.5, %v160_v12 }
  0x39   :  { %119 = vst [vmem:[#allocation7 + $0x20] sm:$0xff] %v111_v13  ;;  %v113_v17 = vadd.f32 0.5, %v105_v14 }
  0x3a   :  { %120 = vst [vmem:[#allocation7 + $0x28] sm:$0xff] %v112_v15  ;;  %v114_v18 = vadd.f32 0.5, %v106_v16 }
  0x3b   :  { %121 = vst [vmem:[#allocation7 + $0x30] sm:$0xff] %v113_v17 }
  0x3c   :  { %122 = vst [vmem:[#allocation7 + $0x38] sm:$0xff] %v114_v18 }
  0x3d   :  { %200 = shalt.err (!%p197_p9)
}
  0x3e   :  { %132 = dma.vmem_to_hbm [thread:$0]  %s130_s21, 1024, %s246_s2, [#allocation6]  }
  0x3f   :  { %213 = dma.done.wait [#allocation6], 1024  }
  0x40   :  { %214 = vsyncadd [#allocation6], 4294966272 }
  0x41   :  { %136 = vsyncpa [#allocation5], 1 }
  0x42   :  { %137 = vsyncpa [#allocation6], 1 }

</bundles_post_ra>
